<compile_context>
chip_gen: v7x
topology: tpu7x:2x2x1
jax: 0.10.0
libtpu: 0.0.40
codegen_flags: <defaults>
</compile_context>

<pallas_src>
import functools

import jax
import jax.numpy as jnp
from jax.experimental import pallas as pl
from jax.experimental.pallas import tpu as pltpu


def _mae_loss_kernel(logits_ref, targets_ref, out_ref, *, batch, block_cols):
    i = pl.program_id(0)

    x = logits_ref[...].astype(jnp.float32)            # (C, tb): classes on sublanes
    tgt = targets_ref[...]                              # (1, tb) int32, lane-dense

    C, tb = x.shape

    # Pick the target-class logit per sample (lane): sublane-iota compare + sublane sum.
    class_ids = jax.lax.broadcasted_iota(jnp.int32, (C, tb), 0)
    tmask = class_ids == tgt                             # (1,tb) broadcast over sublanes
    x_t = jnp.sum(jnp.where(tmask, x, 0.0), axis=0, keepdims=True)   # (1, tb)

    # p_target = 1 / sum_k exp(x_k - x_target); the k==target term is exp(0)=1 so s >= 1.
    e = jnp.exp(x - x_t)                                 # (C, tb)
    s = jnp.sum(e, axis=0, keepdims=True)                # (1, tb)
    s = jnp.minimum(s, jnp.float32(1e30))                # guard inf so Newton never sees inf*0

    # EUP fast reciprocal + one Newton-Raphson step (restores ~f32 accuracy; two cheap
    # VPU ops on a single (1, tb) row).
    r = pl.reciprocal(s, approx=True)
    p_t = r * (2.0 - s * r)                              # ~= softmax(x)[sample, target]

    # Exact identity: sum_k |p_k - onehot_k| = 2 * (1 - p_target).
    per_sample = 2.0 * (1.0 - p_t)                       # (1, tb)

    # Mask lanes of the (possibly ragged) last tile past the true batch size.
    col = i * block_cols + jax.lax.broadcasted_iota(jnp.int32, (1, tb), 1)
    per_sample = jnp.where(col < batch, per_sample, 0.0)

    out_ref[...] = per_sample                            # lane-dense, unmasked store


def mae_loss(logits, targets, num_classes=10, reduction='mean', block_cols=32768):
    """logits: (B, num_classes) float (f32/bf16), targets: (B,) int.
    Returns f32 scalar for 'mean'/'sum', or (B,) f32 per-sample values for 'none'."""
    B, C = logits.shape
    assert C == num_classes
    if reduction not in ('mean', 'sum', 'none'):
        raise ValueError("reduction must be one of 'mean', 'sum', 'none'")

    # Lane-dense presentation: classes on sublanes, samples on lanes (layout plumbing).
    logits_t = logits.T                                   # (C, B), native dtype
    targets_row = targets.astype(jnp.int32).reshape(1, B)

    # Samples-per-step tile: full batch if it fits one block (always a legal block shape),
    # otherwise a multiple of 128 lanes.  VMEM per step ~ 256*tb bytes double-buffered
    # (logits + targets + out), so the 32768 default is ~8 MiB -- fits v5e's 16 MiB default
    # scoped-VMEM limit and v7x's smaller (64 MiB physical / 32 MiB default) budget.
    if B <= block_cols:
        tb = B
    else:
        tb = max(128, (block_cols // 128) * 128)
    grid = (pl.cdiv(B, tb),)

    kernel = functools.partial(_mae_loss_kernel, batch=B, block_cols=tb)

    per_sample = pl.pallas_call(
        kernel,
        out_shape=jax.ShapeDtypeStruct((1, B), jnp.float32),
        grid=grid,
        in_specs=[
            pl.BlockSpec((C, tb), lambda i: (0, i)),      # logits: classes x sample-tile
            pl.BlockSpec((1, tb), lambda i: (0, i)),      # targets: lane-dense row tile
        ],
        out_specs=pl.BlockSpec((1, tb), lambda i: (0, i)),  # per-sample MAE, lane-dense
        compiler_params=pltpu.CompilerParams(dimension_semantics=("parallel",)),
    )(logits_t, targets_row)

    per_sample = per_sample.reshape(B)
    if reduction == 'mean':
        return jnp.sum(per_sample) / B                    # PyTorch divides by B, not B*C
    elif reduction == 'sum':
        return jnp.sum(per_sample)
    return per_sample


def mae_loss_ref(logits, targets, num_classes=10, reduction='mean'):
    probs = jax.nn.softmax(logits.astype(jnp.float32), axis=1)
    one_hot = jax.nn.one_hot(targets, num_classes, dtype=jnp.float32)
    per_sample = jnp.sum(jnp.abs(probs - one_hot), axis=1)
    if reduction == 'mean':
        return jnp.mean(per_sample)
    elif reduction == 'sum':
        return jnp.sum(per_sample)
    return per_sample


if __name__ == "__main__":
    key = jax.random.PRNGKey(0)
    k1, k2, k3, k4 = jax.random.split(key, 4)
    NUM_CLASSES = 10

    # Test 1: small f32 batch (toy shape from the module).
    B = 8
    logits_f32 = jax.random.normal(k1, (B, NUM_CLASSES), dtype=jnp.float32)
    targets = jax.random.randint(k2, (B,), 0, NUM_CLASSES, dtype=jnp.int32)
    out = mae_loss(logits_f32, targets, num_classes=NUM_CLASSES)
    jax.block_until_ready(out)
    ref = mae_loss_ref(logits_f32, targets, NUM_CLASSES)
    assert jnp.allclose(out, ref, atol=1e-5, rtol=1e-5), (out, ref)

    # Test 2: bf16 logits passed straight through (no host-side f32 upcast).
    logits_bf16 = logits_f32.astype(jnp.bfloat16)
    out_bf16 = mae_loss(logits_bf16, targets, num_classes=NUM_CLASSES)
    jax.block_until_ready(out_bf16)
    ref_bf16 = mae_loss_ref(logits_bf16, targets, NUM_CLASSES)
    assert jnp.allclose(out_bf16, ref_bf16, atol=1e-5, rtol=1e-5), (out_bf16, ref_bf16)

    # Test 3: batch not a multiple of the tile -> multi-step parallel grid with ragged-tile
    # masking; also exercise 'sum' and 'none' reductions.
    B3 = 300
    logits3 = jax.random.normal(k3, (B3, NUM_CLASSES), dtype=jnp.float32)
    targets3 = jax.random.randint(k4, (B3,), 0, NUM_CLASSES, dtype=jnp.int32)

    out3 = mae_loss(logits3, targets3, num_classes=NUM_CLASSES, block_cols=128)
    jax.block_until_ready(out3)
    ref3 = mae_loss_ref(logits3, targets3, NUM_CLASSES)
    assert jnp.allclose(out3, ref3, atol=1e-5, rtol=1e-5), (out3, ref3)

    out3_sum = mae_loss(logits3, targets3, num_classes=NUM_CLASSES,
                        reduction='sum', block_cols=128)
    jax.block_until_ready(out3_sum)
    ref3_sum = mae_loss_ref(logits3, targets3, NUM_CLASSES, reduction='sum')
    assert jnp.allclose(out3_sum, ref3_sum, atol=1e-4, rtol=1e-5), (out3_sum, ref3_sum)

    out3_none = mae_loss(logits3, targets3, num_classes=NUM_CLASSES,
                         reduction='none', block_cols=128)
    jax.block_until_ready(out3_none)
    ref3_none = mae_loss_ref(logits3, targets3, NUM_CLASSES, reduction='none')
    assert out3_none.shape == (B3,)
    assert jnp.allclose(out3_none, ref3_none, atol=1e-5, rtol=1e-5)

    print("KERNEL_OK")
</pallas_src>

<mosaic_0001>
module attributes {stable_mosaic.version = 11 : i64} {
  func.func @_mae_loss_kernel(%arg0: i32, %arg1: memref<10x8xf32, #tpu.memory_space<vmem>>, %arg2: memref<1x8xi32, #tpu.memory_space<vmem>>, %arg3: memref<1x8xf32, #tpu.memory_space<vmem>>) attributes {dimension_semantics = [#tpu.dimension_semantics<parallel>], iteration_bounds = array<i64: 1>, scalar_prefetch = 0 : i64, scratch_operands = 0 : i64, tpu.core_type = #tpu.core_type<tc>, window_params = [{transform_indices = @transform_0, window_bounds = array<i64: 10, 8>}, {transform_indices = @transform_1, window_bounds = array<i64: 1, 8>}, {transform_indices = @transform_2, window_bounds = array<i64: 1, 8>}]} {
    %c0 = arith.constant 0 : index
    %c0_0 = arith.constant 0 : index
    %0 = vector.load %arg1[%c0, %c0_0] : memref<10x8xf32, #tpu.memory_space<vmem>>, vector<10x8xf32>
    %c0_1 = arith.constant 0 : index
    %c0_2 = arith.constant 0 : index
    %1 = vector.load %arg2[%c0_1, %c0_2] : memref<1x8xi32, #tpu.memory_space<vmem>>, vector<1x8xi32>
    %2 = tpu.iota {dimensions = array<i32: 0>} : vector<10x8xi32>
    %3 = vector.broadcast %1 : vector<1x8xi32> to vector<10x8xi32>
    %4 = arith.cmpi eq, %2, %3 : vector<10x8xi32>
    %cst = arith.constant 0.000000e+00 : f32
    %5 = vector.broadcast %cst : f32 to vector<10x8xf32>
    %6 = arith.select %4, %0, %5 : vector<10x8xi1>, vector<10x8xf32>
    %cst_3 = arith.constant dense<0.000000e+00> : vector<8xf32>
    %7 = vector.multi_reduction <add>, %6, %cst_3 [0] : vector<10x8xf32> to vector<8xf32>
    %8 = vector.shape_cast %7 : vector<8xf32> to vector<1x8xf32>
    %9 = vector.broadcast %8 : vector<1x8xf32> to vector<10x8xf32>
    %10 = arith.subf %0, %9 : vector<10x8xf32>
    %11 = math.exp %10 : vector<10x8xf32>
    %cst_4 = arith.constant dense<0.000000e+00> : vector<8xf32>
    %12 = vector.multi_reduction <add>, %11, %cst_4 [0] : vector<10x8xf32> to vector<8xf32>
    %13 = vector.shape_cast %12 : vector<8xf32> to vector<1x8xf32>
    %cst_5 = arith.constant 1.000000e+30 : f32
    %14 = vector.broadcast %cst_5 : f32 to vector<1x8xf32>
    %15 = arith.minimumf %13, %14 : vector<1x8xf32>
    %16 = tpu.reciprocal %15 {approx = true} : vector<1x8xf32> -> vector<1x8xf32>
    %17 = arith.mulf %15, %16 : vector<1x8xf32>
    %cst_6 = arith.constant 2.000000e+00 : f32
    %18 = vector.broadcast %cst_6 : f32 to vector<1x8xf32>
    %19 = arith.subf %18, %17 : vector<1x8xf32>
    %20 = arith.mulf %16, %19 : vector<1x8xf32>
    %cst_7 = arith.constant 1.000000e+00 : f32
    %21 = vector.broadcast %cst_7 : f32 to vector<1x8xf32>
    %22 = arith.subf %21, %20 : vector<1x8xf32>
    %cst_8 = arith.constant 2.000000e+00 : f32
    %23 = vector.broadcast %cst_8 : f32 to vector<1x8xf32>
    %24 = arith.mulf %23, %22 : vector<1x8xf32>
    %c8_i32 = arith.constant 8 : i32
    %25 = arith.muli %arg0, %c8_i32 : i32
    %26 = tpu.iota {dimensions = array<i32: 1>} : vector<1x8xi32>
    %27 = vector.broadcast %25 : i32 to vector<1x8xi32>
    %28 = arith.addi %27, %26 : vector<1x8xi32>
    %c8_i32_9 = arith.constant 8 : i32
    %29 = vector.broadcast %c8_i32_9 : i32 to vector<1x8xi32>
    %30 = arith.cmpi slt, %28, %29 : vector<1x8xi32>
    %cst_10 = arith.constant 0.000000e+00 : f32
    %31 = vector.broadcast %cst_10 : f32 to vector<1x8xf32>
    %32 = arith.select %30, %24, %31 : vector<1x8xi1>, vector<1x8xf32>
    %c0_11 = arith.constant 0 : index
    %c0_12 = arith.constant 0 : index
    %33 = vector.load %arg3[%c0_11, %c0_12] : memref<1x8xf32, #tpu.memory_space<vmem>>, vector<1x8xf32>
    tpu.vector_store %arg3[%c0_11, %c0_12], %32 {strides = array<i32>} : memref<1x8xf32, #tpu.memory_space<vmem>>, vector<1x8xf32>,
    return
  }
  func.func @transform_0(%arg0: i32) -> (i32, i32) {
    %c0_i32 = arith.constant 0 : i32
    %c0_i32_0 = arith.constant 0 : i32
    return %c0_i32, %arg0 : i32, i32
  }
  func.func @transform_1(%arg0: i32) -> (i32, i32) {
    %c0_i32 = arith.constant 0 : i32
    %c0_i32_0 = arith.constant 0 : i32
    return %c0_i32, %arg0 : i32, i32
  }
  func.func @transform_2(%arg0: i32) -> (i32, i32) {
    %c0_i32 = arith.constant 0 : i32
    %c0_i32_0 = arith.constant 0 : i32
    return %c0_i32, %arg0 : i32, i32
  }
}

</mosaic_0001>

<bundles_post_ra>
// kernel: tpu_custom_call.1
= control target key start
LH: loop header
LB: loop body
LE: loop exit
PB: predicated region body
PF: predicated region fallthrough
CT: control target
= control target key end

     0   :  { %v15_v0 = vlaneseq  ;;  %s155_s0 = inlined_call_operand.vmem [shape: f32[10,8], index: 0, kind: input, shape index: {}]   ;;  %s156_s1 = inlined_call_operand.vmem [shape: s32[1,8], index: 1, kind: input, shape index: {}]   ;;  %s157_s2 = inlined_call_operand.hbm [shape: f32[1,8], index: 2, kind: output, shape index: {}]  }
   0x1   :  { %v82_v1 = vld [vmem:[%s156_s1] ss:$0 sm:$0xff] }
   0x2   :  { %7 = vsyncpa [#allocation3], 0  ;;  %v12_v2 = vld [vmem:[%s155_s0] sm:$0xff]  ;;  %v16_v3 = vshrl.u32 %v15_v0, 7  ;;  %vm26_vm0 = vcmask 64512   ;;  %vm28_vm2 = vcmask 58368  }
   0x3   :  { %v13_v4 = vld [vmem:[%s155_s0 + $0x8] sm:$0x3]  ;;  %v61_v36 = vand.u32 127, %v15_v0  ;;  %s114_s0 = smov [#allocation2]   ;;  %vm66_vm5 = vcmask 57344  }
   0x4   :  { %v17_v5 = vadd.s32 8, %v16_v3  ;;  %vm22_vm1 = vcmp.eq.s32.totalorder %v16_v3, %v82_v1  ;;  %s74_s1 = sshll.u32 %s114_s0, 4  ;;  %s75_s1 = int_to_ptr.vmem [resolvable:$true] %s74_s1 }
   0x5   :  { %v24_v6 = vsel %vm22_vm1, %v12_v2, 0.0  ;;  %vm64_vm4 = vcmp.lt.s32.totalorder %v61_v36, 8  ;;  %s90_s15 = scalar_lea.vmem %s75_s1, 16  ;;  %s94_s16 = scalar_lea.vmem %s75_s1, 32 }
   0x6   :  { %vm23_vm3 = vcmp.eq.s32.totalorder %v17_v5, %v82_v1  ;;  %v27_v7 = vsel %vm26_vm0, %v24_v6, 0.0  ;;  %p91_p0 = scmp.ne.s32.totalorder %s75_s1, %s90_s15  ;;  %p95_p1 = scmp.lt.s32.totalorder %s75_s1, %s75_s1 }
   0x7   :  { %v25_v8 = vsel %vm23_vm3, %v13_v4, 0.0  ;;  %p96_p2 = scmp.lt.s32.totalorder %s94_s16, %s90_s15 }
   0x8   :  { %v29_v9 = vsel %vm28_vm2, %v25_v8, 0.0 }
   0x9   :  { %v30_v10 = vadd.f32 %v29_v9, %v27_v7  ;;  %p97_p3 = por %p96_p2, %p95_p1 }
   0xb   :  { %v31_v11 = vrot.slane %v30_v10, 4  ;;  %p98_p4 = pnand %p97_p3, %p91_p0 }
   0xd   :  { %v32_v12 = vadd.f32 %v31_v11, %v30_v10 }
   0xf   :  { %v33_v13 = vrot.slane %v32_v12, 2 }
  0x11   :  { %v34_v14 = vadd.f32 %v33_v13, %v32_v12 }
  0x13   :  { %v35_v15 = vrot.slane %v34_v14, 1 }
  0x15   :  { %v36_v16 = vadd.f32 %v35_v15, %v34_v14 }
  0x17   :  { %v37_v17 = vsub.f32 %v12_v2, %v36_v16  ;;  %v38_v18 = vsub.f32 %v13_v4, %v36_v16 }
  0x19   :  { %v39_v19 = vmul.f32 1.442695, %v37_v17  ;;  %v41_v20 = vmul.f32 1.442695, %v38_v18 }
  0x1b   :  { %84 = vpow2.f32 %v39_v19 }
  0x1c   :  { %86 = vpow2.f32 %v41_v20 }
  0x25   :  { %v85_v21 = vpop.eup %84 }
  0x26   :  { %v87_v22 = vpop.eup %86  ;;  %v43_v23 = vsel %vm26_vm0, %v85_v21, 0.0 }
  0x27   :  { %v44_v24 = vsel %vm28_vm2, %v87_v22, 0.0 }
  0x28   :  { %v45_v25 = vadd.f32 %v44_v24, %v43_v23 }
  0x2a   :  { %v46_v26 = vrot.slane %v45_v25, 4 }
  0x2c   :  { %v47_v27 = vadd.f32 %v46_v26, %v45_v25 }
  0x2e   :  { %v48_v28 = vrot.slane %v47_v27, 2 }
  0x30   :  { %v49_v29 = vadd.f32 %v48_v28, %v47_v27 }
  0x32   :  { %v50_v30 = vrot.slane %v49_v29, 1 }
  0x34   :  { %v51_v31 = vadd.f32 %v50_v30, %v49_v29 }
  0x36   :  { %v52_v32 = vmin.f32 %v51_v31, 1e+30 }
  0x38   :  { %88 = vrcp.f32 %v52_v32 }
  0x42   :  { %v89_v33 = vpop.eup %88 }
  0x43   :  { %v54_v34 = vmul.f32 %v89_v33, %v52_v32 }
  0x45   :  { %v55_v35 = vsub.f32 2.0, %v54_v34 }
  0x47   :  { %v56_v37 = vmul.f32 %v89_v33, %v55_v35 }
  0x49   :  { %v57_v38 = vsub.f32 1.0, %v56_v37 }
  0x4b   :  { %v58_v39 = vmul.f32 2.0, %v57_v38 }
  0x4d   :  { %v65_v40 = vsel %vm64_vm4, %v58_v39, 0.0 }
  0x4e   :  { %67 = vst.msk [vmem:[#allocation2] sm:$0x1] %vm66_vm5, %v65_v40 }
  0x4f   :  { %101 = shalt.err (!%p98_p4)
}
  0x50   :  { %s102_s19 = scalar_lea.hbm %s157_s2, 16 }
  0x51   :  { %p103_p5 = scmp.ne.s32.totalorder %s157_s2, %s102_s19  ;;  %p106_p6 = scmp.lt.u32.totalorder %s102_s19, %s157_s2 }
  0x53   :  { %p108_p7 = pnand %p106_p6, %p103_p5 }
  0x55   :  { %111 = shalt.err (!%p108_p7)
}
  0x56   :  { %77 = dma.vmem_to_hbm [thread:$0]  %s75_s1, 16, %s157_s2, [#allocation3]  }
  0x57   :  { %112 = dma.done.wait [#allocation3], 16  }
  0x58   :  { %113 = vsyncadd [#allocation3], 4294967280 }
  0x59   :  { %81 = vsyncpa [#allocation3], 1 }

</bundles_post_ra>
